<compile_context>
chip_gen: v6e
topology: v6e:2x2x1
jax: 0.10.0
libtpu: 0.0.40
codegen_flags: <defaults>
</compile_context>

<pallas_src>
import jax
import jax.numpy as jnp
from jax.experimental import pallas as pl
from jax.experimental.pallas import tpu as pltpu


def _round_up(x, m):
    return (x + m - 1) // m * m


def _output_layer_kernel(conf_ref, x_ref, w_ref, b_ref, o_ref, acc_ref):
    # conf_ref: SMEM (1,) f32 scalar-prefetch    - optimation_confidence
    # x_ref:    VMEM [TM, TK]   (bf16 by default)
    # w_ref:    VMEM [TK, TN]   (bf16 by default)
    # b_ref:    VMEM [1,  TN]   (f32 bias)
    # o_ref:    VMEM [TM, TN]   (output tile)
    # acc_ref:  VMEM [TM, TN]   f32 accumulator scratch
    k = pl.program_id(2)

    @pl.when(k == 0)
    def _():
        acc_ref[...] = jnp.zeros_like(acc_ref)

    acc_ref[...] += jnp.dot(x_ref[...], w_ref[...],
                            preferred_element_type=jnp.float32)

    @pl.when(k == pl.num_programs(2) - 1)
    def _():
        conf = conf_ref[0]
        # Bias add + confidence scale only once, in the epilogue, in f32.
        o_ref[...] = ((acc_ref[...] + b_ref[...]) * conf).astype(o_ref.dtype)


def optimated_output_layer(x, weight, bias, confidence, *,
                           compute_dtype=jnp.bfloat16,
                           out_dtype=None,
                           tm=256, tn=512, tk=512):
    """Forward pass of OptimatedOutputLayer.

    x:          [batch, seq, d_model]
    weight:     [d_model, vocab]  (transpose of PyTorch nn.Linear layout)
    bias:       [vocab]
    confidence: scalar (optimation_confidence)
    Returns [batch, seq, vocab] in `out_dtype` (defaults to x.dtype; pass
    jnp.bfloat16 to halve the logits writeback if downstream accepts it).

    Default tiles (256, 512, 512) keep the double-buffered footprint ~3 MiB,
    which fits v7x's 64 MiB VMEM as well as v5e/v6e's 128 MiB.
    """
    batch, seq, d_model = x.shape
    vocab = weight.shape[1]
    M = batch * seq
    out_dtype = x.dtype if out_dtype is None else out_dtype

    # Shrink tiles for small problems while keeping (8, 128) / MXU alignment.
    TM = min(tm, _round_up(M, 8))
    TK = min(tk, _round_up(d_model, 128))
    TN = min(tn, _round_up(vocab, 128))

    M_pad = _round_up(M, TM)
    K_pad = _round_up(d_model, TK)
    N_pad = _round_up(vocab, TN)

    x2 = x.reshape(M, d_model).astype(compute_dtype)
    w2 = weight.astype(compute_dtype)
    b2 = bias.astype(jnp.float32).reshape(1, vocab)

    if (M_pad, K_pad) != (M, d_model):
        x2 = jnp.pad(x2, ((0, M_pad - M), (0, K_pad - d_model)))
    if (K_pad, N_pad) != (d_model, vocab):
        w2 = jnp.pad(w2, ((0, K_pad - d_model), (0, N_pad - vocab)))
    if N_pad != vocab:
        b2 = jnp.pad(b2, ((0, 0), (0, N_pad - vocab)))

    conf = jnp.asarray(confidence, dtype=jnp.float32).reshape(1)

    grid = (M_pad // TM, N_pad // TN, K_pad // TK)

    in_bytes = jnp.dtype(compute_dtype).itemsize
    out_bytes = jnp.dtype(out_dtype).itemsize
    cost = pl.CostEstimate(
        flops=2 * M_pad * K_pad * N_pad,
        transcendentals=0,
        bytes_accessed=(M_pad * K_pad * in_bytes      # x
                        + K_pad * N_pad * in_bytes    # weight
                        + N_pad * 4                   # bias
                        + M_pad * N_pad * out_bytes)  # logits
    )

    # Double-buffered inputs/outputs + f32 accumulator, with 2x headroom,
    # clamped so the request never exceeds v7x's 64 MiB physical VMEM.
    footprint = (2 * (TM * TK + TK * TN) * in_bytes
                 + 2 * TM * TN * out_bytes
                 + TM * TN * 4
                 + 2 * TN * 4)
    vmem_limit = int(min(64 * 1024 * 1024,
                         max(32 * 1024 * 1024, 2 * footprint)))

    out = pl.pallas_call(
        _output_layer_kernel,
        out_shape=jax.ShapeDtypeStruct((M_pad, N_pad), out_dtype),
        grid_spec=pltpu.PrefetchScalarGridSpec(
            num_scalar_prefetch=1,          # confidence scalar lives in SMEM
            grid=grid,
            in_specs=[
                pl.BlockSpec((TM, TK), lambda i, j, k, _c: (i, k)),   # x
                pl.BlockSpec((TK, TN), lambda i, j, k, _c: (k, j)),   # weight
                pl.BlockSpec((1, TN),  lambda i, j, k, _c: (0, j)),   # bias
            ],
            out_specs=pl.BlockSpec((TM, TN), lambda i, j, k, _c: (i, j)),
            scratch_shapes=[pltpu.VMEM((TM, TN), jnp.float32)],
        ),
        compiler_params=pltpu.CompilerParams(
            dimension_semantics=("parallel", "parallel", "arbitrary"),
            vmem_limit_bytes=vmem_limit,
        ),
        cost_estimate=cost,
    )(conf, x2, w2, b2)

    out = out[:M, :vocab]
    return out.reshape(batch, seq, vocab)


if __name__ == "__main__":
    # Small shapes consistent with the module's forward: x: [batch, seq, d_model]
    batch, seq, d_model, vocab_size = 2, 8, 32, 64

    key = jax.random.PRNGKey(0)
    kx, kw, kb = jax.random.split(key, 3)

    x = jax.random.normal(kx, (batch, seq, d_model), dtype=jnp.float32)

    # Deterministic parameter init (mimic nn.Linear default: U(-1/sqrt(fan_in), 1/sqrt(fan_in)))
    bound = 1.0 / (d_model ** 0.5)
    weight = jax.random.uniform(kw, (d_model, vocab_size), dtype=jnp.float32,
                                minval=-bound, maxval=bound)
    bias = jax.random.uniform(kb, (vocab_size,), dtype=jnp.float32,
                              minval=-bound, maxval=bound)
    confidence = jnp.float32(0.75)  # optimation_confidence parameter

    out = optimated_output_layer(x, weight, bias, confidence)
    out = jax.block_until_ready(out)

    # Reference mirrors the kernel's compute path: bf16 MXU inputs, f32 accumulate,
    # bias add and confidence scale in f32.
    x_bf = x.astype(jnp.bfloat16).astype(jnp.float32)
    w_bf = weight.astype(jnp.bfloat16).astype(jnp.float32)
    ref = (jnp.einsum("bsd,dv->bsv", x_bf, w_bf,
                      precision=jax.lax.Precision.HIGHEST) + bias) * confidence

    assert out.shape == (batch, seq, vocab_size)
    assert jnp.allclose(out, ref, atol=1e-3, rtol=1e-3), "mismatch vs reference"

    print("KERNEL_OK")
</pallas_src>

<mosaic_0001>
module attributes {stable_mosaic.version = 11 : i64} {
  func.func @_output_layer_kernel(%arg0: i32, %arg1: i32, %arg2: i32, %arg3: memref<1xf32, #tpu.memory_space<smem>>, %arg4: memref<16x128xbf16, #tpu.memory_space<vmem>>, %arg5: memref<128x128xbf16, #tpu.memory_space<vmem>>, %arg6: memref<1x128xf32, #tpu.memory_space<vmem>>, %arg7: memref<16x128xf32, #tpu.memory_space<vmem>>, %arg8: memref<16x128xf32, #tpu.memory_space<vmem>>) attributes {dimension_semantics = [#tpu.dimension_semantics<parallel>, #tpu.dimension_semantics<parallel>, #tpu.dimension_semantics<arbitrary>], iteration_bounds = array<i64: 1, 1, 1>, scalar_prefetch = 1 : i64, scratch_operands = 1 : i64, tpu.core_type = #tpu.core_type<tc>, window_params = [{transform_indices = @transform_0, window_bounds = array<i64: 16, 128>}, {transform_indices = @transform_1, window_bounds = array<i64: 128, 128>}, {transform_indices = @transform_2, window_bounds = array<i64: 1, 128>}, {transform_indices = @transform_3, window_bounds = array<i64: 16, 128>}]} {
    %c0_i32 = arith.constant 0 : i32
    %0 = arith.cmpi eq, %arg2, %c0_i32 : i32
    %1 = arith.extui %0 : i1 to i32
    %c0_i32_0 = arith.constant 0 : i32
    %2 = arith.cmpi ne, %1, %c0_i32_0 : i32
    scf.if %2 {
      %cst_10 = arith.constant 0.000000e+00 : f32
      %12 = vector.broadcast %cst_10 : f32 to vector<16x128xf32>
      %c0_11 = arith.constant 0 : index
      %c0_12 = arith.constant 0 : index
      %13 = vector.load %arg8[%c0_11, %c0_12] : memref<16x128xf32, #tpu.memory_space<vmem>>, vector<16x128xf32>
      tpu.vector_store %arg8[%c0_11, %c0_12], %12 {strides = array<i32>} : memref<16x128xf32, #tpu.memory_space<vmem>>, vector<16x128xf32>,
    } else {
    }
    %c0 = arith.constant 0 : index
    %c0_1 = arith.constant 0 : index
    %3 = vector.load %arg8[%c0, %c0_1] : memref<16x128xf32, #tpu.memory_space<vmem>>, vector<16x128xf32>
    %c0_2 = arith.constant 0 : index
    %c0_3 = arith.constant 0 : index
    %4 = vector.load %arg4[%c0_2, %c0_3] : memref<16x128xbf16, #tpu.memory_space<vmem>>, vector<16x128xbf16>
    %c0_4 = arith.constant 0 : index
    %c0_5 = arith.constant 0 : index
    %5 = vector.load %arg5[%c0_4, %c0_5] : memref<128x128xbf16, #tpu.memory_space<vmem>>, vector<128x128xbf16>
    %cst = arith.constant dense<0.000000e+00> : vector<16x128xf32>
    %6 = tpu.matmul %4, %5, %cst {dimension_numbers = #tpu.dot_dimension_numbers<[1], [0], [0], [1], [0, 0, 1, 1], [], []>} : vector<16x128xbf16>, vector<128x128xbf16>, vector<16x128xf32> -> vector<16x128xf32>
    %7 = arith.addf %3, %6 : vector<16x128xf32>
    %c0_6 = arith.constant 0 : index
    %c0_7 = arith.constant 0 : index
    %8 = vector.load %arg8[%c0_6, %c0_7] : memref<16x128xf32, #tpu.memory_space<vmem>>, vector<16x128xf32>
    tpu.vector_store %arg8[%c0_6, %c0_7], %7 {strides = array<i32>} : memref<16x128xf32, #tpu.memory_space<vmem>>, vector<16x128xf32>,
    %c0_i32_8 = arith.constant 0 : i32
    %9 = arith.cmpi eq, %arg2, %c0_i32_8 : i32
    %10 = arith.extui %9 : i1 to i32
    %c0_i32_9 = arith.constant 0 : i32
    %11 = arith.cmpi ne, %10, %c0_i32_9 : i32
    scf.if %11 {
      %c0_10 = arith.constant 0 : index
      %12 = memref.load %arg3[%c0_10] : memref<1xf32, #tpu.memory_space<smem>>
      %c0_11 = arith.constant 0 : index
      %c0_12 = arith.constant 0 : index
      %13 = vector.load %arg8[%c0_11, %c0_12] : memref<16x128xf32, #tpu.memory_space<vmem>>, vector<16x128xf32>
      %c0_13 = arith.constant 0 : index
      %c0_14 = arith.constant 0 : index
      %14 = vector.load %arg6[%c0_13, %c0_14] : memref<1x128xf32, #tpu.memory_space<vmem>>, vector<1x128xf32>
      %15 = vector.broadcast %14 : vector<1x128xf32> to vector<16x128xf32>
      %16 = arith.addf %13, %15 : vector<16x128xf32>
      %17 = vector.broadcast %12 : f32 to vector<16x128xf32>
      %18 = arith.mulf %16, %17 : vector<16x128xf32>
      %c0_15 = arith.constant 0 : index
      %c0_16 = arith.constant 0 : index
      %19 = vector.load %arg7[%c0_15, %c0_16] : memref<16x128xf32, #tpu.memory_space<vmem>>, vector<16x128xf32>
      tpu.vector_store %arg7[%c0_15, %c0_16], %18 {strides = array<i32>} : memref<16x128xf32, #tpu.memory_space<vmem>>, vector<16x128xf32>,
    } else {
    }
    return
  }
  func.func @transform_0(%arg0: i32, %arg1: i32, %arg2: i32, %arg3: memref<1xf32, #tpu.memory_space<smem>>) -> (i32, i32) {
    %c0_i32 = arith.constant 0 : i32
    return %arg0, %arg2 : i32, i32
  }
  func.func @transform_1(%arg0: i32, %arg1: i32, %arg2: i32, %arg3: memref<1xf32, #tpu.memory_space<smem>>) -> (i32, i32) {
    %c0_i32 = arith.constant 0 : i32
    return %arg2, %arg1 : i32, i32
  }
  func.func @transform_2(%arg0: i32, %arg1: i32, %arg2: i32, %arg3: memref<1xf32, #tpu.memory_space<smem>>) -> (i32, i32) {
    %c0_i32 = arith.constant 0 : i32
    %c0_i32_0 = arith.constant 0 : i32
    return %c0_i32, %arg1 : i32, i32
  }
  func.func @transform_3(%arg0: i32, %arg1: i32, %arg2: i32, %arg3: memref<1xf32, #tpu.memory_space<smem>>) -> (i32, i32) {
    %c0_i32 = arith.constant 0 : i32
    return %arg0, %arg1 : i32, i32
  }
}

</mosaic_0001>

<bundles_post_ra>
// kernel: tpu_custom_call.1
= control target key start
LH: loop header
LB: loop body
LE: loop exit
PB: predicated region body
PF: predicated region fallthrough
CT: control target
= control target key end

     0   :  { %10 = vsyncpa [#allocation6], 0  ;;  %s381_s0 = inlined_call_operand.<no memory space> [shape: f32[1], index: 0, kind: input, shape index: {}]   ;;  %s382_s1 = inlined_call_operand.hbm [shape: bf16[16,128], index: 1, kind: input, shape index: {}]   ;;  %s383_s2 = inlined_call_operand.hbm [shape: bf16[128,128], index: 2, kind: input, shape index: {}]   ;;  %s384_s3 = inlined_call_operand.vmem [shape: f32[1,128], index: 3, kind: input, shape index: {}]   ;;  %s385_s4 = inlined_call_operand.hbm [shape: f32[16,128], index: 4, kind: output, shape index: {}]  }
   0x1   :  { %11 = vsyncpa [#allocation9], 0 }
   0x2   :  { %12 = vsyncpa [#allocation7], 0  ;;  %s332_s15 = smov [#allocation5]  }
   0x3   :  { %s18_s16 = sshll.u32 %s332_s15, 4  ;;  %s19_s16 = int_to_ptr.vmem [resolvable:$true] %s18_s16 }
   0x4   :  { %s274_s17 = scalar_lea.vmem %s19_s16, 128  ;;  %p279_p1 = scmp.lt.s32.totalorder %s19_s16, %s19_s16 }
   0x5   :  { %p275_p0 = scmp.ne.s32.totalorder %s19_s16, %s274_s17  ;;  %p280_p2 = scmp.lt.s32.totalorder %s274_s17, %s274_s17 }
   0x7   :  { %p281_p3 = por %p280_p2, %p279_p1 }
   0x9   :  { %p282_p4 = pnand %p281_p3, %p275_p0 }
   0xb   :  { %285 = shalt.err (!%p282_p4)
}
   0xc   :  { %s333_s18 = smov 64   ;;  %s334_s19 = smov 4  }
   0xd   :  { %24 = dma.hbm_to_vmem [thread:$0]  %s382_s1, 128, %s19_s16, [#allocation6], %s333_s18, %s333_s18, %s334_s19  }
   0xe   :  { %s335_s22 = smov [#allocation8]  }
   0xf   :  { %s30_s23 = sshll.u32 %s335_s22, 4  ;;  %s31_s23 = int_to_ptr.vmem [resolvable:$true] %s30_s23 }
  0x10   :  { %s294_s24 = scalar_lea.vmem %s31_s23, 1024  ;;  %p299_p6 = scmp.lt.s32.totalorder %s31_s23, %s31_s23 }
  0x11   :  { %p295_p5 = scmp.ne.s32.totalorder %s31_s23, %s294_s24  ;;  %p300_p7 = scmp.lt.s32.totalorder %s294_s24, %s294_s24 }
  0x13   :  { %p301_p8 = por %p300_p7, %p299_p6 }
  0x15   :  { %p302_p9 = pnand %p301_p8, %p295_p5 }
  0x17   :  { %305 = shalt.err (!%p302_p9)
}
  0x18   :  { %36 = dma.hbm_to_vmem [thread:$0]  %s383_s2, 1024, %s31_s23, [#allocation9], %s333_s18, %s333_s18, %s334_s19  }
  0x19   :  { %326 = dma.done.wait [#allocation6], 128  }
  0x1a   :  { %327 = vsyncadd [#allocation6], 4294967168 }
  0x1b   :  { %328 = dma.done.wait [#allocation9], 1024  }
  0x1c   :  { %329 = vsyncadd [#allocation9], 4294966272  ;;  %v336_v0 = vmov 0.0   ;;  %vm337_vm0 = vmmov 0   ;;  %v257_v1 = vld [vmem:[#allocation8 + $0x38] sm:$0xff]   ;;  %v258_v2 = vld [vmem:[#allocation8 + $0x30] sm:$0xff]   ;;  %v186_v12 = vstv %s381_s0 }
  0x1d   :  { %228 = vmatprep.subr.bf16.mxu0 %v336_v0  ;;  %244 = vmatprep.mubr.msk.bf16.mxu0 %vm337_vm0, %v336_v0  ;;  %v259_v3 = vld [vmem:[#allocation8 + $0x28] sm:$0xff]   ;;  %v260_v4 = vld [vmem:[#allocation8 + $0x20] sm:$0xff]   ;;  %v261_v5 = vld [vmem:[#allocation8 + $0x18] sm:$0xff]   ;;  %s338_s29 = smov [#allocation10]  }
  0x1e   :  { %229 = vmatpush3.bf16.msra.mxu0 %v257_v1  ;;  %v262_v6 = vld [vmem:[#allocation8 + $0x10] sm:$0xff]   ;;  %v263_v7 = vld [vmem:[#allocation8 + $0x8] sm:$0xff]   ;;  %v264_v8 = vld [vmem:[#allocation8] sm:$0xff]   ;;  %s196_s30 = sshll.u32 %s338_s29, 4  ;;  %s197_s30 = int_to_ptr.vmem [resolvable:$true] %s196_s30 }
  0x1f   :  { %230 = vmatprep.subr.bf16.mxu0 %v336_v0  ;;  %v265_v9 = vld [vmem:[#allocation5] sm:$0xff]   ;;  %s306_s5 = scalar_lea.vmem %s197_s30, 256  ;;  %p311_p11 = scmp.lt.s32.totalorder %s197_s30, %s197_s30 }
  0x20   :  { %v218_v10 = vld [vmem:[%s384_s3] ss:$0 sm:$0xff]  ;;  %p307_p10 = scmp.ne.s32.totalorder %s197_s30, %s306_s5  ;;  %p312_p12 = scmp.lt.s32.totalorder %s306_s5, %s306_s5 }
  0x22   :  { %231 = vmatpush3.bf16.msra.mxu0 %v258_v2  ;;  %p313_p13 = por %p312_p12, %p311_p11 }
  0x23   :  { %232 = vmatprep.subr.bf16.mxu0 %v336_v0 }
  0x24   :  { %p314_p0 = pnand %p313_p13, %p307_p10 }
  0x26   :  { %233 = vmatpush3.bf16.msra.mxu0 %v259_v3 }
  0x27   :  { %234 = vmatprep.subr.bf16.mxu0 %v336_v0 }
  0x2a   :  { %235 = vmatpush3.bf16.msra.mxu0 %v260_v4 }
  0x2b   :  { %236 = vmatprep.subr.bf16.mxu0 %v336_v0 }
  0x2e   :  { %237 = vmatpush3.bf16.msra.mxu0 %v261_v5 }
  0x2f   :  { %238 = vmatprep.subr.bf16.mxu0 %v336_v0 }
  0x32   :  { %239 = vmatpush3.bf16.msra.mxu0 %v262_v6 }
  0x33   :  { %240 = vmatprep.subr.bf16.mxu0 %v336_v0 }
  0x36   :  { %241 = vmatpush3.bf16.msra.mxu0 %v263_v7 }
  0x37   :  { %242 = vmatprep.subr.bf16.mxu0 %v336_v0 }
  0x3a   :  { %243 = vmatpush3.bf16.msra.mxu0 %v264_v8 }
  0x3d   :  { %245 = vmatmul.mubr.bf16.vlgmr.msra.gmra.mxu0 %v265_v9 }
  0xfd   :  { %v160_v11 = vpop.f32.mrf.mxu0 }
  0xfe   :  { %v184_v13 = vadd.f32 %v218_v10, %v160_v11 }
  0xff   :  { %v246_v14 = vpop.f32.mrf.mxu0 }
 0x100   :  { %v187_v15 = vmul.f32 %v186_v12, %v184_v13 }
 0x101   :  { %v163_v16 = vpop.f32.mrf.mxu0 }
 0x102   :  { %189 = vst [vmem:[#allocation10] sm:$0xff] %v187_v15  ;;  %v185_v17 = vadd.f32 %v218_v10, %v163_v16 }
 0x103   :  { %v247_v18 = vpop.f32.mrf.mxu0 }
 0x104   :  { %v188_v19 = vmul.f32 %v186_v12, %v185_v17 }
 0x106   :  { %190 = vst [vmem:[#allocation10 + $0x8] sm:$0xff] %v188_v19 }
 0x107   :  { %317 = shalt.err (!%p314_p0)
}
 0x108   :  { %s339_s0 = smov 128   ;;  %s340_s3 = smov 8  }
 0x109   :  { %202 = dma.vmem_to_hbm [thread:$0]  %s197_s30, 256, %s385_s4, [#allocation7], %s339_s0, %s339_s0, %s340_s3  }
 0x10a   :  { %330 = dma.done.wait [#allocation7], 256  }
 0x10b   :  { %331 = vsyncadd [#allocation7], 4294967040 }
 0x10c   :  { %206 = vsyncpa [#allocation6], 1 }
 0x10d   :  { %207 = vsyncpa [#allocation9], 1 }
 0x10e   :  { %208 = vsyncpa [#allocation7], 1 }

</bundles_post_ra>
